<compile_context>
chip_gen: v6e
topology: v6e:2x2x1
jax: 0.10.0
libtpu: 0.0.40
codegen_flags: <defaults>
</compile_context>

<pallas_src>
import jax
import jax.numpy as jnp
from jax.experimental import pallas as pl
from jax.experimental.pallas import tpu as pltpu


def _combine_kernel(s_ref, v0_ref, v2_ref, out_ref):
    # s_ref:   SMEM (2,) float32  -- [scores[0], scores[1] + scores[2]]
    # v0_ref / v2_ref / out_ref: VMEM (tm, C) tiles.
    s0 = s_ref[0]
    s12 = s_ref[1]
    # Compute promotes to f32 (SMEM scalars are f32); explicit cast keeps the
    # store a full unmasked narrow-dtype vst for bf16/f16/int8 views.
    out_ref[...] = (s0 * v0_ref[...] + s12 * v2_ref[...]).astype(out_ref.dtype)


def attention_layer_init(num_views=3, key=None):
    """Xavier-uniform init of attention_weights with shape (num_views, 1).

    torch.nn.init.xavier_uniform_ on a (num_views, 1) tensor uses
    fan_in = 1 (dim 1), fan_out = num_views (dim 0).
    """
    if key is None:
        key = jax.random.PRNGKey(42)
    fan_in, fan_out = 1, num_views
    bound = jnp.sqrt(6.0 / (fan_in + fan_out))
    return jax.random.uniform(
        key, (num_views, 1), dtype=jnp.float32, minval=-bound, maxval=bound
    )


def _vmem_budget():
    """(per-stream target block bytes, vmem_limit_bytes) per TPU generation."""
    cap = None
    try:
        info = pltpu.get_tpu_info()
        cap = getattr(info, "vmem_capacity_bytes", None)
    except Exception:
        cap = None
    if cap is None:
        cap = 64 << 20  # conservative default (v7x-sized)
    if cap <= (64 << 20):
        # v7x: 64 MiB VMEM per TensorCore -> keep total pipelined footprint
        # (6 double-buffered buffers) well under ~48 MiB.
        return 6 << 20, 48 << 20
    # v5e / v6e: 128 MiB physical VMEM; raise scoped limit so bigger blocks fit.
    return 8 << 20, 64 << 20


def _choose_layout(total, itemsize, target_block_bytes):
    """Pick a lane-dense (R, C) reshape and a sublane-aligned row tile tm."""
    lane = 128
    rows0 = total // lane
    # Largest divisor f of rows0 with f <= 256  ->  C = 128*f <= 32768 lanes.
    f = 1
    for cand in range(min(rows0, 256), 0, -1):
        if rows0 % cand == 0:
            f = cand
            break
    C = lane * f
    R = rows0 // f

    # Dtype-aware sublane granule: 8 for 4B, 16 for 2B, 32 for 1B dtypes.
    sublane = {4: 8, 2: 16, 1: 32}.get(itemsize, 8)

    bytes_per_row = C * itemsize
    tm = max(1, target_block_bytes // bytes_per_row)

    if tm >= R:
        # Whole slab would be one block.  Split into >=2 sublane-aligned steps
        # when possible so the "parallel" row grid can shard across v7x's two
        # TensorCores (no effect on single-TC v5e/v6e).
        if R >= 2 * sublane:
            tm = ((R // 2) // sublane) * sublane
        else:
            return R, C, R  # single full-extent block (no sublane constraint)

    tm = max(sublane, (tm // sublane) * sublane)
    tm = min(tm, R)
    if tm >= R:
        return R, C, R

    # Prefer an even number of grid steps so a ragged tail does not land on a
    # single TensorCore on v7x.
    steps = pl.cdiv(R, tm)
    if steps > 1 and steps % 2 == 1:
        cand_tm = max(sublane, (pl.cdiv(R, steps + 1) // sublane) * sublane)
        if cand_tm < R and pl.cdiv(R, cand_tm) % 2 == 0:
            tm = cand_tm
    return R, C, tm


def attention_layer_forward(
    attention_weights,
    *views,
    target_block_bytes=None,
    min_pallas_bytes=1 << 20,
):
    """Pallas implementation of AttentionLayer.forward.

    attention_weights: (num_views, 1) float32
    views: tensors of identical shape (e.g. NCHW).
    """
    # Parameter preprocessing (3-element softmax) stays in plain JAX; fold the
    # two scalars that multiply the same view (one fewer rounding step than the
    # reference's s1*v2 + s2*v2, well within tolerance).
    scores = jax.nn.softmax(attention_weights[:, 0], axis=0)
    s = jnp.stack([scores[0], scores[1] + scores[2]]).astype(jnp.float32)

    v0, v2 = views[0], views[2]  # views[1] is unused in the reference forward
    orig_shape = v0.shape
    total = v0.size
    itemsize = jnp.dtype(v0.dtype).itemsize

    if total % 128 != 0 or total * itemsize < min_pallas_bytes:
        # Small-tensor bypass and exotic-shape fallback: a 2-term axpy fuses
        # trivially in XLA; pallas_call launch + DMA setup would dominate.
        # TODO(synk): lane-dense reshape needs total % 128 == 0; padding would
        # cost more than it saves for this memory-bound op.
        return scores[0] * v0 + scores[1] * v2 + scores[2] * v2

    derived_block_bytes, vmem_limit = _vmem_budget()
    if target_block_bytes is None:
        target_block_bytes = derived_block_bytes

    R, C, tm = _choose_layout(total, itemsize, target_block_bytes)
    grid = (pl.cdiv(R, tm),)

    out_2d = pl.pallas_call(
        _combine_kernel,
        out_shape=jax.ShapeDtypeStruct((R, C), v0.dtype),
        grid=grid,
        in_specs=[
            pl.BlockSpec(memory_space=pltpu.SMEM),       # folded scores (2,)
            pl.BlockSpec((tm, C), lambda i: (i, 0)),     # view0 tile
            pl.BlockSpec((tm, C), lambda i: (i, 0)),     # view2 tile
        ],
        out_specs=pl.BlockSpec((tm, C), lambda i: (i, 0)),
        compiler_params=pltpu.CompilerParams(
            dimension_semantics=("parallel",),
            vmem_limit_bytes=vmem_limit,
        ),
    )(s, v0.reshape(R, C), v2.reshape(R, C))

    return out_2d.reshape(orig_shape)


def _reference(attention_weights, *views):
    scores = jax.nn.softmax(attention_weights[:, 0], axis=0)
    return scores[0] * views[0] + scores[1] * views[2] + scores[2] * views[2]


if __name__ == "__main__":
    key = jax.random.PRNGKey(0)
    k0, k1, k2, kw = jax.random.split(key, 4)

    attention_weights = attention_layer_init(num_views=3, key=kw)

    # --- Primary small test: NCHW (2, 4, 16, 16), forced through the Pallas
    # kernel (single full-extent block).
    shape = (2, 4, 16, 16)
    view0 = jax.random.normal(k0, shape, dtype=jnp.float32)
    view1 = jax.random.normal(k1, shape, dtype=jnp.float32)
    view2 = jax.random.normal(k2, shape, dtype=jnp.float32)

    out = attention_layer_forward(
        attention_weights, view0, view1, view2, min_pallas_bytes=0
    )
    out = jax.block_until_ready(out)
    ref = _reference(attention_weights, view0, view1, view2)
    assert jnp.allclose(out, ref, atol=1e-5, rtol=1e-5), "mismatch (small kernel)"

    # --- Same small shape through the default bypass path.
    out_b = attention_layer_forward(attention_weights, view0, view1, view2)
    out_b = jax.block_until_ready(out_b)
    assert jnp.allclose(out_b, ref, atol=1e-5, rtol=1e-5), "mismatch (bypass)"

    # --- Tiled-grid test (multi-step, ragged tail): (5, 8, 128, 128) f32 with
    # a small block target -> R=20, C=32768, tm=8, grid=(3,).
    shape2 = (5, 8, 128, 128)
    kk0, kk1, kk2 = jax.random.split(jax.random.PRNGKey(1), 3)
    w0 = jax.random.normal(kk0, shape2, dtype=jnp.float32)
    w1 = jax.random.normal(kk1, shape2, dtype=jnp.float32)
    w2 = jax.random.normal(kk2, shape2, dtype=jnp.float32)

    out2 = attention_layer_forward(
        attention_weights, w0, w1, w2, target_block_bytes=256 << 10
    )
    out2 = jax.block_until_ready(out2)
    ref2 = _reference(attention_weights, w0, w1, w2)
    assert jnp.allclose(out2, ref2, atol=1e-5, rtol=1e-5), "mismatch (tiled)"

    # --- bf16 test: exercises dtype-aware sublane rounding (16) and the
    # explicit output cast; default block target -> >=2-step even grid.
    shape3 = (8, 8, 128, 128)
    kb0, kb1, kb2 = jax.random.split(jax.random.PRNGKey(2), 3)
    b0 = jax.random.normal(kb0, shape3, dtype=jnp.bfloat16)
    b1 = jax.random.normal(kb1, shape3, dtype=jnp.bfloat16)
    b2 = jax.random.normal(kb2, shape3, dtype=jnp.bfloat16)

    out3 = attention_layer_forward(attention_weights, b0, b1, b2)
    out3 = jax.block_until_ready(out3)
    ref3 = _reference(attention_weights, b0, b1, b2)
    assert jnp.allclose(
        out3.astype(jnp.float32), ref3.astype(jnp.float32), atol=5e-2, rtol=5e-2
    ), "mismatch (bf16)"

    print("KERNEL_OK")
</pallas_src>

<mosaic_0001>
module attributes {stable_mosaic.version = 11 : i64} {
  func.func @_combine_kernel(%arg0: i32, %arg1: memref<2xf32, #tpu.memory_space<smem>>, %arg2: memref<1x2048xf32, #tpu.memory_space<vmem>>, %arg3: memref<1x2048xf32, #tpu.memory_space<vmem>>, %arg4: memref<1x2048xf32, #tpu.memory_space<vmem>>) attributes {dimension_semantics = [#tpu.dimension_semantics<parallel>], iteration_bounds = array<i64: 1>, scalar_prefetch = 0 : i64, scratch_operands = 0 : i64, tpu.core_type = #tpu.core_type<tc>, window_params = [{transform_indices = @transform_0, window_bounds = array<i64: 2>}, {transform_indices = @transform_1, window_bounds = array<i64: 1, 2048>}, {transform_indices = @transform_2, window_bounds = array<i64: 1, 2048>}, {transform_indices = @transform_3, window_bounds = array<i64: 1, 2048>}]} {
    %c0 = arith.constant 0 : index
    %0 = memref.load %arg1[%c0] : memref<2xf32, #tpu.memory_space<smem>>
    %c1 = arith.constant 1 : index
    %1 = memref.load %arg1[%c1] : memref<2xf32, #tpu.memory_space<smem>>
    %c0_0 = arith.constant 0 : index
    %c0_1 = arith.constant 0 : index
    %2 = vector.load %arg2[%c0_0, %c0_1] : memref<1x2048xf32, #tpu.memory_space<vmem>>, vector<1x2048xf32>
    %3 = vector.broadcast %0 : f32 to vector<1x2048xf32>
    %4 = arith.mulf %3, %2 : vector<1x2048xf32>
    %c0_2 = arith.constant 0 : index
    %c0_3 = arith.constant 0 : index
    %5 = vector.load %arg3[%c0_2, %c0_3] : memref<1x2048xf32, #tpu.memory_space<vmem>>, vector<1x2048xf32>
    %6 = vector.broadcast %1 : f32 to vector<1x2048xf32>
    %7 = arith.mulf %6, %5 : vector<1x2048xf32>
    %8 = arith.addf %4, %7 : vector<1x2048xf32>
    %c0_4 = arith.constant 0 : index
    %c0_5 = arith.constant 0 : index
    %9 = vector.load %arg4[%c0_4, %c0_5] : memref<1x2048xf32, #tpu.memory_space<vmem>>, vector<1x2048xf32>
    tpu.vector_store %arg4[%c0_4, %c0_5], %8 {strides = array<i32>} : memref<1x2048xf32, #tpu.memory_space<vmem>>, vector<1x2048xf32>,
    return
  }
  func.func @transform_0(%arg0: i32) -> i32 {
    %c0_i32 = arith.constant 0 : i32
    %c0_i32_0 = arith.constant 0 : i32
    return %c0_i32 : i32
  }
  func.func @transform_1(%arg0: i32) -> (i32, i32) {
    %c0_i32 = arith.constant 0 : i32
    %c0_i32_0 = arith.constant 0 : i32
    return %arg0, %c0_i32 : i32, i32
  }
  func.func @transform_2(%arg0: i32) -> (i32, i32) {
    %c0_i32 = arith.constant 0 : i32
    %c0_i32_0 = arith.constant 0 : i32
    return %arg0, %c0_i32 : i32, i32
  }
  func.func @transform_3(%arg0: i32) -> (i32, i32) {
    %c0_i32 = arith.constant 0 : i32
    %c0_i32_0 = arith.constant 0 : i32
    return %arg0, %c0_i32 : i32, i32
  }
}

</mosaic_0001>

<bundles_post_ra>
// kernel: tpu_custom_call.1
= control target key start
LH: loop header
LB: loop body
LE: loop exit
PB: predicated region body
PF: predicated region fallthrough
CT: control target
= control target key end

     0   :  { %8 = vsyncpa [#allocation5], 0  ;;  %s200_s0 = inlined_call_operand.hbm [shape: f32[2], index: 0, kind: input, shape index: {}]   ;;  %s201_s1 = inlined_call_operand.hbm [shape: f32[1,2048], index: 1, kind: input, shape index: {}]   ;;  %s202_s2 = inlined_call_operand.hbm [shape: f32[1,2048], index: 2, kind: input, shape index: {}]   ;;  %s203_s3 = inlined_call_operand.hbm [shape: f32[1,2048], index: 3, kind: output, shape index: {}]  }
   0x1   :  { %9 = vsyncpa [#allocation3], 0 }
   0x2   :  { %10 = vsyncpa [#allocation8], 0 }
   0x3   :  { %11 = vsyncpa [#allocation4], 0  ;;  %s164_s12 = smov [#allocation2]   ;;  %s165_s15 = smov [#allocation6]  }
   0x4   :  { %19 = dma.hbm_to_smem %s200_s0, 16, %s164_s12, [#allocation5]  }
   0x5   :  { %s26_s16 = sshll.u32 %s165_s15, 4  ;;  %s166_s17 = smov [#allocation7]   ;;  %s27_s16 = int_to_ptr.vmem [resolvable:$true] %s26_s16 }
   0x6   :  { %s36_s18 = sshll.u32 %s166_s17, 4  ;;  %s104_s19 = scalar_lea.vmem %s27_s16, 256  ;;  %s37_s18 = int_to_ptr.vmem [resolvable:$true] %s36_s18 }
   0x7   :  { %p105_p0 = scmp.ne.s32.totalorder %s27_s16, %s104_s19  ;;  %p109_p1 = scmp.lt.s32.totalorder %s27_s16, %s27_s16 }
   0x8   :  { %p110_p2 = scmp.lt.s32.totalorder %s104_s19, %s104_s19 }
   0xa   :  { %p111_p3 = por %p110_p2, %p109_p1 }
   0xc   :  { %p112_p4 = pnand %p111_p3, %p105_p0 }
   0xe   :  { %115 = shalt.err (!%p112_p4)
}
   0xf   :  { %29 = dma.hbm_to_vmem [thread:$0]  %s201_s1, 256, %s27_s16, [#allocation3]  }
  0x10   :  { %s124_s22 = scalar_lea.vmem %s37_s18, 256  ;;  %p129_p6 = scmp.lt.s32.totalorder %s37_s18, %s37_s18 }
  0x11   :  { %p125_p5 = scmp.ne.s32.totalorder %s37_s18, %s124_s22  ;;  %p130_p7 = scmp.lt.s32.totalorder %s124_s22, %s124_s22 }
  0x13   :  { %p131_p8 = por %p130_p7, %p129_p6 }
  0x15   :  { %p132_p9 = pnand %p131_p8, %p125_p5 }
  0x17   :  { %135 = shalt.err (!%p132_p9)
}
  0x18   :  { %39 = dma.hbm_to_vmem [thread:$0]  %s202_s2, 256, %s37_s18, [#allocation8]  }
  0x19   :  { %156 = dma.done.wait [#allocation5], 16  }
  0x1a   :  { %157 = vsyncadd [#allocation5], 4294967280 }
  0x1b   :  { %158 = dma.done.wait [#allocation3], 256  }
  0x1c   :  { %159 = vsyncadd [#allocation3], 4294967040 }
  0x1d   :  { %160 = dma.done.wait [#allocation8], 256  }
  0x1e   :  { %161 = vsyncadd [#allocation8], 4294967040 }
  0x1f   :  { %49 = sfence }
  0x20   :  { %s50_s1 = sld [smem:[#allocation2]]  ;;  %v52_v0 = vld [vmem:[#allocation6] sm:$0xff]  ;;  %v53_v1 = vld [vmem:[#allocation6 + $0x8] sm:$0xff]  ;;  %v57_v2 = vld [vmem:[#allocation7] sm:$0xff]  ;;  %s167_s25 = smov [#allocation9]  }
  0x21   :  { %s83_s24 = sld [smem:[#allocation2 + $0x1]]  ;;  %v58_v3 = vld [vmem:[#allocation7 + $0x8] sm:$0xff]  ;;  %s72_s26 = sshll.u32 %s167_s25, 4  ;;  %s73_s26 = int_to_ptr.vmem [resolvable:$true] %s72_s26 }
  0x22   :  { %s136_s2 = scalar_lea.vmem %s73_s26, 256  ;;  %p141_p11 = scmp.lt.s32.totalorder %s73_s26, %s73_s26 }
  0x23   :  { %p137_p10 = scmp.ne.s32.totalorder %s73_s26, %s136_s2  ;;  %p142_p12 = scmp.lt.s32.totalorder %s136_s2, %s136_s2 }
  0x25   :  { %p143_p13 = por %p142_p12, %p141_p11 }
  0x26   :  { %v54_v4 = vstv %s50_s1 }
  0x27   :  { %v55_v5 = vmul.f32 %v54_v4, %v52_v0  ;;  %v59_v6 = vstv %s83_s24  ;;  %v56_v7 = vmul.f32 %v54_v4, %v53_v1  ;;  %p144_p0 = pnand %p143_p13, %p137_p10 }
  0x28   :  { %v60_v8 = vmul.f32 %v59_v6, %v57_v2  ;;  %v61_v9 = vmul.f32 %v59_v6, %v58_v3 }
  0x2a   :  { %v62_v10 = vadd.f32 %v60_v8, %v55_v5  ;;  %v63_v11 = vadd.f32 %v61_v9, %v56_v7 }
  0x2c   :  { %64 = vst [vmem:[#allocation9] sm:$0xff] %v62_v10  ;;  %65 = vst [vmem:[#allocation9 + $0x8] sm:$0xff] %v63_v11 }
  0x2d   :  { %147 = shalt.err (!%p144_p0)
}
  0x2e   :  { %75 = dma.vmem_to_hbm [thread:$0]  %s73_s26, 256, %s203_s3, [#allocation4]  }
  0x2f   :  { %162 = dma.done.wait [#allocation4], 256  }
  0x30   :  { %163 = vsyncadd [#allocation4], 4294967040 }
  0x31   :  { %79 = vsyncpa [#allocation3], 1 }
  0x32   :  { %80 = vsyncpa [#allocation8], 1 }
  0x33   :  { %81 = vsyncpa [#allocation4], 1 }
  0x34   :  { %82 = vsyncpa [#allocation5], 1 }

</bundles_post_ra>
